<compile_context>
chip_gen: v6e
topology: v6e:2x2x1
jax: 0.10.0
libtpu: 0.0.40
codegen_flags: <defaults>
</compile_context>

<pallas_src>
import jax
import jax.numpy as jnp
from jax.experimental import pallas as pl
from jax.experimental.pallas import tpu as pltpu


# ----------------------------- Pallas kernel ------------------------------- #

def _unembed_kernel(h_ref, w_ref, logits_ref, last_ref):
    """One vocab tile.

    h_ref:      (S, D)   bf16  hidden states (resident across the vocab grid)
    w_ref:      (D, tn)  bf16  unembedding tile, pre-transposed (lane dim = vocab)
    logits_ref: (S, tn)  f32   FFN-path logits tile
    last_ref:   (1, tn)  f32   explicit-product-path tile (last position);
                               a slice of the same accumulation — no 2nd matmul.
    """
    acc = jnp.dot(h_ref[...], w_ref[...], preferred_element_type=jnp.float32)
    logits_ref[...] = acc
    s = h_ref.shape[0]
    last_ref[...] = acc[s - 1:s, :]


# ------------------------------ JAX wrappers -------------------------------- #

def prepare_unembedding(weight, *, tn=512):
    """One-time init (NOT in the per-call path): bf16 cast, transpose to (D, V),
    and pad the vocab dim to a multiple of tn so output stores stay lane-dense.

    weight: (V, D) f32 — PyTorch lm_head.weight layout.
    Returns w_t: (D, V_pad) bf16.
    """
    V, D = weight.shape
    v_pad = pl.cdiv(V, tn) * tn
    w_t = jnp.asarray(weight, jnp.bfloat16).T          # (D, V), cast + transpose once
    if v_pad != V:
        w_t = jnp.pad(w_t, ((0, 0), (0, v_pad - V)))
    return w_t


def unembed_logits(hidden, w_t, vocab_size, *, tn=512):
    """hidden: (S, D); w_t: (D, V_pad) bf16 pre-prepared unembedding.

    Returns:
      all_logits: (S, V) f32 — FFN (lm_head) path over all positions.
      new_logits: (V,)   f32 — explicit h_last @ U path (last position).
    """
    S, D = hidden.shape
    D2, Vp = w_t.shape
    assert D == D2
    assert tn % 256 == 0 and Vp % tn == 0, "vocab tile must be lane-dense and padded"

    h = hidden.astype(jnp.bfloat16)
    if w_t.dtype != jnp.bfloat16:          # no-op when prepared correctly at init
        w_t = w_t.astype(jnp.bfloat16)

    grid = (Vp // tn,)

    # Double-buffered weight + output tiles, resident hidden, small last-row tile.
    vmem_need = 2 * (D * tn * 2) + 2 * (S * tn * 4) + 2 * (S * D * 2) + 2 * (tn * 4)
    vmem_limit = int(min(max(4 * vmem_need, 32 * 1024 * 1024), 64 * 1024 * 1024))

    all_logits, last = pl.pallas_call(
        _unembed_kernel,
        out_shape=(
            jax.ShapeDtypeStruct((S, Vp), jnp.float32),
            jax.ShapeDtypeStruct((1, Vp), jnp.float32),
        ),
        grid=grid,
        in_specs=[
            pl.BlockSpec((S, D), lambda j: (0, 0)),    # hidden: resident
            pl.BlockSpec((D, tn), lambda j: (0, j)),   # weight: streamed by vocab tile
        ],
        out_specs=(
            pl.BlockSpec((S, tn), lambda j: (0, j)),   # lane-dense output tiles
            pl.BlockSpec((1, tn), lambda j: (0, j)),
        ),
        compiler_params=pltpu.CompilerParams(
            dimension_semantics=("parallel",),          # megacore splits the vocab
            vmem_limit_bytes=vmem_limit,
        ),
        cost_estimate=pl.CostEstimate(
            flops=2 * S * Vp * D,
            transcendentals=0,
            bytes_accessed=(S * D + D * Vp) * 2 + (S * Vp + Vp) * 4,
        ),
    )(h, w_t)

    # Strip vocab padding.
    return all_logits[:, :vocab_size], last[0, :vocab_size]


# --------------------------------- Driver ----------------------------------- #

if __name__ == "__main__":
    # Small synthetic stand-ins for GPT-2: seq=16, hidden=128, vocab=1027
    # (vocab deliberately NOT a multiple of 128 to exercise the padding path,
    # mirroring the real V=50257).
    S, D, V = 16, 128, 1027
    TN = 512

    key = jax.random.PRNGKey(0)
    k_h, k_w = jax.random.split(key)
    # TODO(synk): GPT-2 transformer backbone + tokenizer have no Pallas equivalent;
    # synthetic hidden states stand in for transformer_outputs[0][0].
    hidden_states = jax.random.normal(k_h, (S, D), dtype=jnp.float32) * 0.02
    unembedding_w = jax.random.normal(k_w, (V, D), dtype=jnp.float32) * 0.02  # lm_head.weight (V, D)

    # One-time init: bf16 cast + transpose + vocab padding (out of the per-call path).
    w_t = prepare_unembedding(unembedding_w, tn=TN)

    # Single fused Pallas call produces both logit paths from one weight stream.
    all_logits, new_logits = unembed_logits(hidden_states, w_t, V, tn=TN)
    orig_logits = all_logits[-1]           # outputs.logits[0][-1]

    # TODO(synk): tokenizer.decode of the predicted token ids has no Pallas / JAX equivalent.
    # top-k glue in plain JAX (a standalone Pallas call here is pure launch overhead).
    _, pred_idx_orig = jax.lax.top_k(orig_logits, 10)
    _, pred_idx_new = jax.lax.top_k(new_logits, 10)

    # MSE between the two logit vectors — plain JAX glue.
    diff = new_logits - orig_logits
    distance = jnp.mean(diff * diff)

    # Independent f32 reference on the ORIGINAL inputs (non-tautological check).
    ref_logits = hidden_states @ unembedding_w.T

    jax.block_until_ready((all_logits, new_logits, pred_idx_orig,
                           pred_idx_new, distance, ref_logits))

    # Module semantics: both paths share the same weights, so the distance is ~0
    # (here bit-identical: path 2 is a slice of the path-1 accumulation).
    assert float(distance) < 1e-12
    assert bool(jnp.all(pred_idx_orig == pred_idx_new))

    # Kernel vs plain-JAX f32 reference (bf16-input tolerance).
    err = float(jnp.max(jnp.abs(all_logits - ref_logits)))
    scale = float(jnp.max(jnp.abs(ref_logits))) + 1e-12
    assert err / scale < 5e-2, (err, scale)

    print("KERNEL_OK")
</pallas_src>

<mosaic_0001>
module attributes {stable_mosaic.version = 11 : i64} {
  func.func @_unembed_kernel(%arg0: i32, %arg1: memref<16x128xbf16, #tpu.memory_space<vmem>>, %arg2: memref<128x512xbf16, #tpu.memory_space<vmem>>, %arg3: memref<16x512xf32, #tpu.memory_space<vmem>>, %arg4: memref<1x512xf32, #tpu.memory_space<vmem>>) attributes {dimension_semantics = [#tpu.dimension_semantics<parallel>], iteration_bounds = array<i64: 3>, scalar_prefetch = 0 : i64, scratch_operands = 0 : i64, tpu.core_type = #tpu.core_type<tc>, window_params = [{pipeline_mode = #tpu.pipeline_mode<synchronous>, transform_indices = @transform_0, window_bounds = array<i64: 16, 128>}, {transform_indices = @transform_1, window_bounds = array<i64: 128, 512>}, {transform_indices = @transform_2, window_bounds = array<i64: 16, 512>}, {transform_indices = @transform_3, window_bounds = array<i64: 1, 512>}]} {
    %c0 = arith.constant 0 : index
    %c0_0 = arith.constant 0 : index
    %0 = vector.load %arg1[%c0, %c0_0] : memref<16x128xbf16, #tpu.memory_space<vmem>>, vector<16x128xbf16>
    %c0_1 = arith.constant 0 : index
    %c0_2 = arith.constant 0 : index
    %1 = vector.load %arg2[%c0_1, %c0_2] : memref<128x512xbf16, #tpu.memory_space<vmem>>, vector<128x512xbf16>
    %cst = arith.constant dense<0.000000e+00> : vector<16x512xf32>
    %2 = tpu.matmul %0, %1, %cst {dimension_numbers = #tpu.dot_dimension_numbers<[1], [0], [0], [1], [0, 0, 1, 1], [], []>} : vector<16x128xbf16>, vector<128x512xbf16>, vector<16x512xf32> -> vector<16x512xf32>
    %c0_3 = arith.constant 0 : index
    %c0_4 = arith.constant 0 : index
    %3 = vector.load %arg3[%c0_3, %c0_4] : memref<16x512xf32, #tpu.memory_space<vmem>>, vector<16x512xf32>
    tpu.vector_store %arg3[%c0_3, %c0_4], %2 {strides = array<i32>} : memref<16x512xf32, #tpu.memory_space<vmem>>, vector<16x512xf32>,
    %4 = vector.extract_strided_slice %2 {offsets = [15, 0], sizes = [1, 512], strides = [1, 1]} : vector<16x512xf32> to vector<1x512xf32>
    %c0_5 = arith.constant 0 : index
    %c0_6 = arith.constant 0 : index
    %5 = vector.load %arg4[%c0_5, %c0_6] : memref<1x512xf32, #tpu.memory_space<vmem>>, vector<1x512xf32>
    tpu.vector_store %arg4[%c0_5, %c0_6], %4 {strides = array<i32>} : memref<1x512xf32, #tpu.memory_space<vmem>>, vector<1x512xf32>,
    return
  }
  func.func @transform_0(%arg0: i32) -> (i32, i32) {
    %c0_i32 = arith.constant 0 : i32
    %c0_i32_0 = arith.constant 0 : i32
    %c0_i32_1 = arith.constant 0 : i32
    return %c0_i32, %c0_i32_0 : i32, i32
  }
  func.func @transform_1(%arg0: i32) -> (i32, i32) {
    %c0_i32 = arith.constant 0 : i32
    %c0_i32_0 = arith.constant 0 : i32
    return %c0_i32, %arg0 : i32, i32
  }
  func.func @transform_2(%arg0: i32) -> (i32, i32) {
    %c0_i32 = arith.constant 0 : i32
    %c0_i32_0 = arith.constant 0 : i32
    return %c0_i32, %arg0 : i32, i32
  }
  func.func @transform_3(%arg0: i32) -> (i32, i32) {
    %c0_i32 = arith.constant 0 : i32
    %c0_i32_0 = arith.constant 0 : i32
    return %c0_i32, %arg0 : i32, i32
  }
}

</mosaic_0001>

<bundles_post_ra>
// kernel: tpu_custom_call.1
= control target key start
LH: loop header
LB: loop body
LE: loop exit
PB: predicated region body
PF: predicated region fallthrough
CT: control target
= control target key end

     0   :  { %9 = vsyncpa [#allocation3], 0  ;;  %s1301_s0 = inlined_call_operand.hbm [shape: bf16[16,128], index: 0, kind: input, shape index: {}]   ;;  %s1302_s1 = inlined_call_operand.hbm [shape: bf16[128,1536], index: 1, kind: input, shape index: {}]   ;;  %s1303_s2 = inlined_call_operand.hbm [shape: f32[16,1536], index: 2, kind: output, shape index: {0}]   ;;  %s1304_s3 = inlined_call_operand.hbm [shape: f32[1,1536], index: 3, kind: output, shape index: {1}]  }
   0x1   :  { %10 = vsyncpa [#allocation6], 0 }
   0x2   :  { %12 = vsyncpa [#allocation6 + $0x1], 0 }
   0x3   :  { %13 = vsyncpa [#allocation4], 0 }
   0x4   :  { %15 = vsyncpa [#allocation4 + $0x1], 0 }
   0x5   :  { %16 = vsyncpa [#allocation9], 0 }
   0x6   :  { %18 = vsyncpa [#allocation9 + $0x1], 0  ;;  %s1063_s12 = smov 0   ;;  %s1065_s13 = smov 0  }
   0x7   :  { %s1067_s14 = smov 0   ;;  %s1069_s15 = smov 0  }
   0x8 LB: > { %s1084_s16 = sadd.s32 4294967295, %s1027_s15   ;;  %s698_s17 = sadd.s32 4294967294, %s1027_s15   ;;  %s1027_s15 = sphi %s1069_s15, %s1325_s15   ;;  %s1023_s14 = sphi %s1067_s14, %s1324_s14   ;;  %s1019_s13 = sphi %s1065_s13, %s1323_s13   ;;  %s1015_s12 = sphi %s1063_s12, %s1322_s12  }
   0x9   : > { %s1088_s18 = sadd.s32 1, %s1027_s15   ;;  %s52_s19 = sadd.s32 1, %s1023_s14 }
   0xa   : > { %s49_s20 = ssub.s32 %s1027_s15, %s1088_s18  ;;  %p59_p0 = scmp.ne.s32.totalorder %s1023_s14, %s1019_s13 }
   0xb   : > { %p50_p1 = scmp.eq.s32.totalorder %s49_s20, 0  ;;  %p60_p2 = scmp.eq.s32.totalorder %s1027_s15, 0 }
   0xc   : > { %p65_p3 = scmp.ne.s32.totalorder %s1019_s13, %s1015_s12  ;;  %p1307_p4 = scmp.eq.s32.totalorder %s1084_s16, 0 }
   0xd   : > { %s1100_s21 = scalar_select %p50_p1, %s1023_s14, %s52_s19  }
   0xe   : > { %p1102_p5 = por %p60_p2, %p59_p0  ;;  %p1108_p6 = por %p1307_p4, %p65_p3 }
   0xf   : > { %p89_p7 = scmp.eq.s32.totalorder %s1084_s16, 2  ;;  %p95_p8 = scmp.eq.s32.totalorder %s698_s17, 2 }
  0x10   : > { %s1310_s23 = scalar_select %p1108_p6, 1, 0 }
  0x11   : > { %p699_p9 = scmp.ge.s32.totalorder %s1027_s15, 1  ;;  %p128_p10 = scmp.lt.s32.totalorder %s1027_s15, 4 }
  0x12   : > { %p1115_p11 = por %p89_p7, %p59_p0  ;;  %p1119_p12 = por %p95_p8, %p65_p3 }
  0x13   : > { %p1123_p13 = pnand %p699_p9, %p128_p10  ;;  %s1029_s27 = smov [#allocation2]  }
  0x14   : > { %s1311_s24 = scalar_select %p1115_p11, 1, 0 }
  0x15   : > { %s1312_s25 = scalar_select %p1119_p12, 1, 0 }
  0x16   : > { %s1313_s26 = scalar_select %p1123_p13, 1, 0 }
  0x17   : > { %p764_p1 = pneg %p1123_p13  ;;  %s140_s28 = sshll.u32 %s1029_s27, 4  ;;  %s141_s28 = int_to_ptr.vmem [resolvable:$true] %s140_s28 }
  0x18   : > { %p780_p0 = scmp.lt.s32.totalorder %s1027_s15, 3  ;;  %s154_s30 = sand.u32 1, %s1023_s14  }
  0x19   : > { %p1131_p2 = pnand %p764_p1, %p1307_p4  ;;  %s886_s4 = scalar_lea.vmem %s141_s28, 128 }
  0x1a   : > { %p887_p7 = scmp.ne.s32.totalorder %s141_s28, %s886_s4  ;;  %p894_p10 = scmp.lt.s32.totalorder %s141_s28, %s141_s28 }
  0x1b   : > { %p877_p3 = pneg %p1131_p2  ;;  %p895_p12 = scmp.lt.s32.totalorder %s886_s4, %s886_s4 }
  0x1d   : > { %p889_p8 = pnand %p887_p7, %p877_p3  ;;  %p896_p11 = por %p895_p12, %p894_p10 }
  0x1f   : > { %p890_p9 = pneg %p889_p8 }
  0x21   : > { %p897_p6 = pnand %p896_p11, %p890_p9 }
  0x23   : > { %900 = shalt.err (!%p897_p6)
}
  0x24   : > { %s1030_s5 = smov 64   ;;  %s1031_s6 = smov 4  }
  0x25   : > { %767 = dma.hbm_to_vmem [thread:$0]  (!%p1131_p2), %s1301_s0, 128, %s141_s28, [#allocation3], %s1030_s5, %s1030_s5, %s1031_s6  }
  0x26   : > { %p1148_p1 = pnand %p780_p0, %p1102_p5  ;;  %s702_s10 = sshll.u32 %s154_s30, 8 }
  0x27   : > { %s751_s11 = sshll.u32 %s1027_s15, 8  ;;  %s158_s27 = scalar_lea.vmem [#allocation5], %s702_s10 }
  0x28   : > { %s1156_s20 = scalar_lea.hbm %s1302_s1, %s751_s11  ;;  %s165_s29 = sshll.u32 %s158_s27, 4  ;;  %s1158_s29 = int_to_ptr.vmem [resolvable:$true] %s165_s29 }
  0x29   : > { %s1160_s22 = scalar_lea.sflag [#allocation6], %s154_s30  ;;  %s901_s28 = scalar_lea.hbm %s1156_s20, 4096 }
  0x2a   : > { %p902_p5 = scmp.ne.s32.totalorder %s1156_s20, %s901_s28  ;;  %p903_p6 = pneg %p1148_p1 }
  0x2b   : > { %s906_s6 = scalar_lea.hbm %s1302_s1, 12288  ;;  %p907_p2 = scmp.lt.s32.totalorder %s1156_s20, %s1302_s1 }
  0x2c   : > { %p904_p11 = pnand %p903_p6, %p902_p5  ;;  %p908_p0 = scmp.lt.s32.totalorder %s906_s6, %s901_s28 }
  0x2e   : > { %p905_p12 = pneg %p904_p11  ;;  %p909_p3 = por %p908_p0, %p907_p2 }
  0x30   : > { %p910_p7 = pnand %p909_p3, %p905_p12 }
  0x32   : > { %913 = shalt.err (!%p910_p7)
}
  0x33   : > { %s914_s30 = scalar_lea.vmem %s1158_s29, 4096  ;;  %s1032_s10 = smov [#allocation5]  }
  0x34   : > { %p915_p8 = scmp.ne.s32.totalorder %s1158_s29, %s914_s30  ;;  %s919_s11 = sshll.u32 %s1032_s10, 4  ;;  %s920_s11 = int_to_ptr.vmem [resolvable:$false] %s919_s11 }
  0x35   : > { %s921_s17 = scalar_lea.vmem %s920_s11, 8192  ;;  %p922_p5 = scmp.lt.s32.totalorder %s1158_s29, %s920_s11 }
  0x36   : > { %p917_p9 = pnand %p915_p8, %p903_p6  ;;  %p923_p11 = scmp.lt.s32.totalorder %s921_s17, %s914_s30 }
  0x38   : > { %p918_p10 = pneg %p917_p9  ;;  %p924_p4 = por %p923_p11, %p922_p5 }
  0x3a   : > { %p925_p13 = pnand %p924_p4, %p918_p10 }
  0x3c   : > { %928 = shalt.err (!%p925_p13)
}
  0x3d   : > { %s1033_s19 = smov 768   ;;  %s1034_s27 = smov 256  }
  0x3e   : > { %s1035_s28 = smov 16   ;;  %p1316_p6 = scmp.ne.s32.totalorder %s1313_s26, 0 }
  0x3f   : > { %771 = dma.hbm_to_vmem [thread:$0]  (!%p1148_p1), %s1156_s20, 4096, %s1158_s29, %s1160_s22, %s1033_s19, %s1034_s27, %s1035_s28  }
  0x40   : > { %177 = sbr.rel (%p1316_p6) target bundleno = 345 (0x159), region = 28  ;;  %p1317_p12 = scmp.eq.s32.totalorder (!%p1316_p6), %s1084_s16, 0 }
  0x45   : > { %998 = dma.done.wait (%p1317_p12), [#allocation3], 128   ;;  %p1318_p2 = pmov %p1317_p12 }
  0x46   : > { %s1188_s4 = sand.u32 1, %s1019_s13   ;;  %p1319_p4 = scmp.ne.s32.totalorder %s1310_s23, 0 }
  0x47   : > { %1000 = vsyncadd (%p1318_p2), [#allocation3], 4294967168  ;;  %s707_s5 = sshll.u32 %s1188_s4, 8  ;;  %s184_s6 = scalar_lea.sflag [#allocation6], %s1188_s4 }
  0x48   : > { %s1192_s7 = scalar_lea.vmem [#allocation5], %s707_s5 }
  0x49   : > { %1002 = dma.done.wait (%p1319_p4), %s184_s6, 4096  }
  0x4a   : > { %1004 = vsyncadd (%p1319_p4), %s184_s6, 4294963200  ;;  %v1036_v0 = vmov 0   ;;  %v826_v1 = vld [vmem:[%s1192_s7 + $0xe4] ss:$16 sps:$4 sm:$0xff]   ;;  %v828_v2 = vld [vmem:[%s1192_s7 + $0xec] ss:$16 sps:$4 sm:$0xff]   ;;  %v522_v36 = vlaneseq }
  0x4b   : > { %451 = vmatprep.mubr.bf16.mxu0 %v1036_v0  ;;  %494 = vmatprep.mubr.bf16.mxu1 %v1036_v0  ;;  %v830_v3 = vld [vmem:[%s1192_s7 + $0xe0] ss:$16 sps:$4 sm:$0xff]   ;;  %v831_v4 = vld [vmem:[%s1192_s7 + $0xe8] ss:$16 sps:$4 sm:$0xff]   ;;  %v832_v5 = vld [vmem:[%s1192_s7 + $0xc4] ss:$16 sps:$4 sm:$0xff]  }
  0x4c   : > { %419 = vmatprep.subr.bf16.mxu0 %v826_v1  ;;  %462 = vmatprep.subr.bf16.mxu1 %v828_v2  ;;  %v834_v6 = vld [vmem:[%s1192_s7 + $0xcc] ss:$16 sps:$4 sm:$0xff]   ;;  %v836_v7 = vld [vmem:[%s1192_s7 + $0xc0] ss:$16 sps:$4 sm:$0xff]   ;;  %v837_v8 = vld [vmem:[%s1192_s7 + $0xc8] ss:$16 sps:$4 sm:$0xff]  }
  0x4d   : > { %420 = vmatpush1.bf16.msra.mxu0 %v830_v3  ;;  %463 = vmatpush1.bf16.msra.mxu1 %v831_v4  ;;  %v838_v9 = vld [vmem:[%s1192_s7 + $0xa4] ss:$16 sps:$4 sm:$0xff]   ;;  %v840_v10 = vld [vmem:[%s1192_s7 + $0xac] ss:$16 sps:$4 sm:$0xff]   ;;  %v842_v11 = vld [vmem:[%s1192_s7 + $0xa0] ss:$16 sps:$4 sm:$0xff]  }
  0x4e   : > { %421 = vmatprep.subr.bf16.mxu0 %v832_v5  ;;  %464 = vmatprep.subr.bf16.mxu1 %v834_v6  ;;  %v843_v12 = vld [vmem:[%s1192_s7 + $0xa8] ss:$16 sps:$4 sm:$0xff]   ;;  %v844_v13 = vld [vmem:[%s1192_s7 + $0x84] ss:$16 sps:$4 sm:$0xff]   ;;  %v846_v14 = vld [vmem:[%s1192_s7 + $0x8c] ss:$16 sps:$4 sm:$0xff]  }
  0x4f   : > { %v848_v15 = vld [vmem:[%s1192_s7 + $0x80] ss:$16 sps:$4 sm:$0xff]   ;;  %v849_v16 = vld [vmem:[%s1192_s7 + $0x88] ss:$16 sps:$4 sm:$0xff]   ;;  %v850_v17 = vld [vmem:[%s1192_s7 + $0x64] ss:$16 sps:$4 sm:$0xff]  }
  0x50   : > { %v852_v18 = vld [vmem:[%s1192_s7 + $0x6c] ss:$16 sps:$4 sm:$0xff]   ;;  %v854_v19 = vld [vmem:[%s1192_s7 + $0x60] ss:$16 sps:$4 sm:$0xff]   ;;  %v855_v20 = vld [vmem:[%s1192_s7 + $0x68] ss:$16 sps:$4 sm:$0xff]  }
  0x51   : > { %422 = vmatpush1.bf16.msra.mxu0 %v836_v7  ;;  %465 = vmatpush1.bf16.msra.mxu1 %v837_v8  ;;  %v856_v21 = vld [vmem:[%s1192_s7 + $0x44] ss:$16 sps:$4 sm:$0xff]   ;;  %v858_v22 = vld [vmem:[%s1192_s7 + $0x4c] ss:$16 sps:$4 sm:$0xff]   ;;  %v860_v23 = vld [vmem:[%s1192_s7 + $0x40] ss:$16 sps:$4 sm:$0xff]  }
  0x52   : > { %423 = vmatprep.subr.bf16.mxu0 %v838_v9  ;;  %466 = vmatprep.subr.bf16.mxu1 %v840_v10  ;;  %v861_v24 = vld [vmem:[%s1192_s7 + $0x48] ss:$16 sps:$4 sm:$0xff]   ;;  %v862_v25 = vld [vmem:[%s1192_s7 + $0x24] ss:$16 sps:$4 sm:$0xff]   ;;  %v864_v26 = vld [vmem:[%s1192_s7 + $0x2c] ss:$16 sps:$4 sm:$0xff]  }
  0x53   : > { %v866_v27 = vld [vmem:[%s1192_s7 + $0x20] ss:$16 sps:$4 sm:$0xff]   ;;  %v867_v28 = vld [vmem:[%s1192_s7 + $0x28] ss:$16 sps:$4 sm:$0xff]   ;;  %v868_v29 = vld [vmem:[%s1192_s7 + $0x4] ss:$16 sps:$4 sm:$0xff]  }
  0x54   : > { %v870_v30 = vld [vmem:[%s1192_s7 + $0xc] ss:$16 sps:$4 sm:$0xff]   ;;  %v872_v31 = vld [vmem:[%s1192_s7] ss:$16 sps:$4 sm:$0xff]   ;;  %v873_v32 = vld [vmem:[%s1192_s7 + $0x8] ss:$16 sps:$4 sm:$0xff]  }
  0x55   : > { %424 = vmatpush1.bf16.msra.mxu0 %v842_v11  ;;  %467 = vmatpush1.bf16.msra.mxu1 %v843_v12  ;;  %v874_v33 = vld [vmem:[#allocation2] sm:$0xff]   ;;  %s708_s23 = sshll.u32 %s1188_s4, 6  ;;  %v1037_v34 = vmov 1966171168   ;;  %v523_v40 = vshrl.u32 %v522_v36, 7  ;;  %s752_s20 = sshll.u32 %s1084_s16, 9 }
  0x56   : > { %425 = vmatprep.subr.bf16.mxu0 %v844_v13  ;;  %468 = vmatprep.subr.bf16.mxu1 %v846_v14  ;;  %v520_v35 = vunpack.c.l.s4 %v1037_v34  ;;  %s207_s26 = scalar_lea.vmem [#allocation7], %s708_s23  ;;  %s1238_s8 = scalar_lea.hbm %s1303_s2, %s752_s20 }
  0x57   : > { %s567_s9 = sshll.u32 %s207_s26, 4  ;;  %s709_s30 = sshll.u32 %s1188_s4, 2  ;;  %s1233_s9 = int_to_ptr.vmem [resolvable:$true] %s567_s9 }
  0x58   : > { %v521_v39 = vunpack.c.0.s8 %v520_v35  ;;  %s549_s10 = scalar_lea.sflag [#allocation4], %s1188_s4  ;;  %s929_s11 = scalar_lea.vmem %s1233_s9, 1024 }
  0x59   : > { %426 = vmatpush1.bf16.msra.mxu0 %v848_v15  ;;  %469 = vmatpush1.bf16.msra.mxu1 %v849_v16  ;;  %p930_p13 = scmp.ne.s32.totalorder %s1233_s9, %s929_s11  ;;  %p1320_p1 = scmp.ne.s32.totalorder %s1311_s24, 0 }
  0x5a   : > { %427 = vmatprep.subr.bf16.mxu0 %v850_v17  ;;  %470 = vmatprep.subr.bf16.mxu1 %v852_v18  ;;  %v524_v45 = vsub.s32 %v521_v39, %v523_v40  ;;  %s1038_s17 = smov [#allocation7]  }
  0x5b   : > { %p931_p0 = pnand %p930_p13, %p1320_p1  ;;  %s933_s19 = sshll.u32 %s1038_s17, 4  ;;  %s934_s19 = int_to_ptr.vmem [resolvable:$false] %s933_s19 }
  0x5c   : > { %s935_s27 = scalar_lea.vmem %s934_s19, 2048  ;;  %p936_p7 = scmp.lt.s32.totalorder %s1233_s9, %s934_s19 }
  0x5d   : > { %428 = vmatpush1.bf16.msra.mxu0 %v854_v19  ;;  %471 = vmatpush1.bf16.msra.mxu1 %v855_v20  ;;  %p932_p3 = pneg %p931_p0  ;;  %p937_p8 = scmp.lt.s32.totalorder %s935_s27, %s929_s11 }
  0x5e   : > { %429 = vmatprep.subr.bf16.mxu0 %v856_v21  ;;  %472 = vmatprep.subr.bf16.mxu1 %v858_v22 }
  0x5f   : > { %p938_p9 = por %p937_p8, %p936_p7 }
  0x61   : > { %430 = vmatpush1.bf16.msra.mxu0 %v860_v23  ;;  %473 = vmatpush1.bf16.msra.mxu1 %v861_v24  ;;  %p939_p10 = pnand %p938_p9, %p932_p3 }
  0x62   : > { %431 = vmatprep.subr.bf16.mxu0 %v862_v25  ;;  %474 = vmatprep.subr.bf16.mxu1 %v864_v26 }
  0x65   : > { %432 = vmatpush1.bf16.msra.mxu0 %v866_v27  ;;  %475 = vmatpush1.bf16.msra.mxu1 %v867_v28 }
  0x66   : > { %433 = vmatprep.subr.bf16.mxu0 %v868_v29  ;;  %476 = vmatprep.subr.bf16.mxu1 %v870_v30 }
  0x69   : > { %434 = vmatpush1.bf16.msra.mxu0 %v872_v31  ;;  %477 = vmatpush1.bf16.msra.mxu1 %v873_v32 }
  0x6c   : > { %452 = vmatmul.mubr.bf16.vlgmr.msra.gmra.mxu0 %v874_v33  ;;  %495 = vmatmul.mubr.bf16.vlgmr.msra.gmra.mxu1 %v874_v33 }
 0x12c   : > { %v453_v37 = vpop.f32.mrf.mxu0  ;;  %v496_v38 = vpop.f32.mrf.mxu1 }
 0x12d   : > { %505 = vst [vmem:[%s207_s26] sm:$0xff] %v453_v37  ;;  %507 = vst [vmem:[%s207_s26 + $0x10] sm:$0xff] %v496_v38 }
 0x12e   : > { %v455_v41 = vpop.f32.mrf.mxu0  ;;  %v498_v42 = vpop.f32.mrf.mxu1 }
 0x12f   : > { %506 = vst [vmem:[%s207_s26 + $0x8] sm:$0xff] %v455_v41  ;;  %508 = vst [vmem:[%s207_s26 + $0x18] sm:$0xff] %v498_v42 }
 0x130   : > { %v457_v43 = vpop.f32.mrf.mxu0  ;;  %v500_v44 = vpop.f32.mrf.mxu1 }
 0x131   : > { %509 = vst [vmem:[%s207_s26 + $0x20] sm:$0xff] %v457_v43  ;;  %511 = vst [vmem:[%s207_s26 + $0x30] sm:$0xff] %v500_v44 }
 0x132   : > { %v459_v46 = vpop.f32.mrf.mxu0  ;;  %v502_v47 = vpop.f32.mrf.mxu1 }
 0x133   : > { %510 = vst [vmem:[%s207_s26 + $0x28] sm:$0xff] %v459_v46  ;;  %v517_v48 = vcombine.high %v457_v43, %v459_v46  ;;  %512 = vst [vmem:[%s207_s26 + $0x38] sm:$0xff] %v502_v47  ;;  %v518_v49 = vcombine.high %v500_v44, %v502_v47 }
 0x134   : > { %942 = shalt.err (!%p939_p10)
}
 0x135   : > { %s943_s28 = scalar_lea.hbm %s1238_s8, 1024  ;;  %s947_s7 = scalar_lea.hbm %s1303_s2, 3072 }
 0x136   : > { %p944_p5 = scmp.ne.s32.totalorder %s1238_s8, %s943_s28  ;;  %p948_p12 = scmp.lt.s32.totalorder %s1238_s8, %s1303_s2 }
 0x137   : > { %p949_p2 = scmp.lt.s32.totalorder %s947_s7, %s943_s28 }
 0x138   : > { %p945_p11 = pnand %p944_p5, %p1320_p1 }
 0x139   : > { %p950_p4 = por %p949_p2, %p948_p12 }
 0x13a   : > { %p946_p6 = pneg %p945_p11 }
 0x13c   : > { %p951_p13 = pnand %p950_p4, %p946_p6 }
 0x13e   : > { %954 = shalt.err (!%p951_p13)
}
 0x13f   : > { %s1039_s20 = smov 512   ;;  %s1040_s29 = smov 1536   ;;  %v525_v50 = vrot.slane %v517_v48, %v524_v45  ;;  %v532_v51 = vrot.slane %v518_v49, %v524_v45  ;;  %vm545_vm0 = vcmp.lt.s32.totalorder %v522_v36, 512 }
 0x140   : > { %s1041_s22 = smov 32   ;;  %s753_s11 = sshll.u32 %s1084_s16, 6 }
 0x141   : > { %760 = dma.vmem_to_hbm [thread:$0]  (%p1320_p1), %s1233_s9, 1024, %s1238_s8, %s549_s10, %s1039_s20, %s1040_s29, %s1041_s22   ;;  %v533_v52 = vcombine.high %v525_v50, %v532_v51 }
 0x142   : > { %s214_s17 = scalar_lea.vmem [#allocation8], %s709_s30  ;;  %s582_s5 = scalar_lea.hbm %s1304_s3, %s753_s11 }
 0x143   : > { %s584_s19 = sshll.u32 %s214_s17, 4  ;;  %v540_v53 = vrot.slane %v533_v52, %v524_v45  ;;  %s554_s6 = scalar_lea.sflag [#allocation9], %s1188_s4  ;;  %s585_s19 = int_to_ptr.vmem [resolvable:$true] %s584_s19 }
 0x144   : > { %s955_s9 = scalar_lea.vmem %s585_s19, 64  ;;  %s1042_s16 = smov [#allocation8]  }
 0x145   : > { %v541_v54 = vcombine.high %v540_v53, %v540_v53  ;;  %p956_p0 = scmp.ne.s32.totalorder %s585_s19, %s955_s9  ;;  %s959_s8 = sshll.u32 %s1042_s16, 4  ;;  %s960_s8 = int_to_ptr.vmem [resolvable:$false] %s959_s8 }
 0x146   : > { %s961_s30 = scalar_lea.vmem %s960_s8, 128  ;;  %p962_p8 = scmp.lt.s32.totalorder %s585_s19, %s960_s8 }
 0x147   : > { %547 = vst.msk [vmem:[%s214_s17] sm:$0xf] %vm545_vm0, %v541_v54  ;;  %p957_p3 = pnand %p956_p0, %p1320_p1  ;;  %p963_p9 = scmp.lt.s32.totalorder %s961_s30, %s955_s9 }
 0x149   : > { %p958_p7 = pneg %p957_p3  ;;  %p964_p10 = por %p963_p9, %p962_p8 }
 0x14b   : > { %p965_p5 = pnand %p964_p10, %p958_p7 }
 0x14d   : > { %968 = shalt.err (!%p965_p5)
}
 0x14e   : > { %s969_s10 = scalar_lea.hbm %s582_s5, 64  ;;  %s973_s23 = scalar_lea.hbm %s1304_s3, 192 }
 0x14f   : > { %p970_p11 = scmp.ne.s32.totalorder %s582_s5, %s969_s10  ;;  %p974_p2 = scmp.lt.s32.totalorder %s582_s5, %s1304_s3 }
 0x150   : > { %p975_p4 = scmp.lt.s32.totalorder %s973_s23, %s969_s10 }
 0x151   : > { %p971_p6 = pnand %p970_p11, %p1320_p1 }
 0x152   : > { %p976_p13 = por %p975_p4, %p974_p2 }
 0x153   : > { %p972_p12 = pneg %p971_p6 }
 0x155   : > { %p977_p0 = pnand %p976_p13, %p972_p12 }
 0x157   : > { %980 = shalt.err (!%p977_p0)
}
 0x158   : > { %761 = dma.vmem_to_hbm [thread:$0]  (%p1320_p1), %s585_s19, 64, %s582_s5, %s554_s6  }
 0x159 PF: > { %p782_p3 = scmp.ge.s32.totalorder %s1027_s15, 2  ;;  %s596_s29 = sand.u32 1, %s1015_s12  }
 0x15a   : > { %p1321_p7 = scmp.ne.s32.totalorder %s1312_s25, 0  ;;  %s597_s22 = scalar_lea.sflag [#allocation4], %s596_s29 }
 0x15c   : > { %p773_p8 = pnand %p782_p3, %p1321_p7 }
 0x15e   : > { %p774_p9 = pneg %p773_p8 }
 0x160   : > { %1006 = dma.done.wait (%p774_p9), %s597_s22, 1024  }
 0x161   : > { %1008 = vsyncadd (%p774_p9), %s597_s22, 4294966272  ;;  %s606_s11 = scalar_lea.sflag [#allocation9], %s596_s29 }
 0x162   : > { %1010 = dma.done.wait (%p774_p9), %s606_s11, 64  }
 0x163   : > { %1012 = vsyncadd (%p774_p9), %s606_s11, 4294967232  ;;  %p21_p1 = scmp.ge.s32.totalorder %s1088_s18, 5   ;;  %s1322_s12 = smov %s1019_s13 }
 0x164   : > { %s1323_s13 = smov %s1023_s14  ;;  %s1324_s14 = smov %s1100_s21 }
 0x165   : > { %s1325_s15 = smov %s1088_s18  ;;  %23 = sbr.rel (!%p21_p1) target bundleno = 8 (0x8), region = 95 }
 0x16a   :  { %611 = vsyncpa [#allocation3], 1 }
 0x16b   :  { %613 = vsyncpa [#allocation3 + $0x1], 1 }
 0x16c   :  { %614 = vsyncpa [#allocation6], 1 }
 0x16d   :  { %616 = vsyncpa [#allocation6 + $0x1], 1 }
 0x16e   :  { %617 = vsyncpa [#allocation4], 1 }
 0x16f   :  { %619 = vsyncpa [#allocation4 + $0x1], 1 }
 0x170   :  { %620 = vsyncpa [#allocation9], 1 }
 0x171   :  { %622 = vsyncpa [#allocation9 + $0x1], 1 }

</bundles_post_ra>
